<compile_context>
chip_gen: v5e
topology: v5e:2x2
jax: 0.10.0
libtpu: 0.0.40
codegen_flags: <defaults>
</compile_context>

<pallas_src>
import functools
import math

import jax
import jax.numpy as jnp
from jax import lax
from jax.experimental import pallas as pl
from jax.experimental.pallas import tpu as pltpu

# Deterministic "prior parameters" (standard normal).
_PRIOR_LOC = 0.0
_PRIOR_SCALE = 1.0
_HALF_LOG_2PI = 0.5 * math.log(2.0 * math.pi)
_LDJ_CONST = _HALF_LOG_2PI + math.log(_PRIOR_SCALE)   # per-element constant term

# Per-block DMA footprint cap (bytes). With default double buffering this is
# <= 16 MiB of VMEM for the input stream — safe on v7x (64 MiB physical) while
# still large enough to sit near the HBM roofline on v5e/v6e.
_MAX_BLOCK_BYTES = 8 * 1024 * 1024
_VMEM_LIMIT_BYTES = 32 * 1024 * 1024


def _largest_mult8_divisor(x, cap):
    """Largest multiple-of-8 divisor of x that is <= cap (None if none)."""
    start = min(int(x), int(cap))
    start -= start % 8
    for t in range(start, 0, -8):
        if x % t == 0:
            return t
    return None


# ---------------------------------------------------------------------------
# Fast tiled kernel: grid = (batch, K-blocks), block = (1, TR, 128).
# ---------------------------------------------------------------------------
def _logprob_kernel(z_ref, out_ref, acc_ref, *, tr, off_elems, k_split, masked):
    k = pl.program_id(1)

    @pl.when(k == 0)
    def _init():
        acc_ref[...] = jnp.zeros_like(acc_ref)

    x = z_ref[0].astype(jnp.float32)                       # (TR, 128), f32 accum
    if _PRIOR_LOC != 0.0:                                  # folded away for N(0,1)
        x = x - _PRIOR_LOC
    if _PRIOR_SCALE != 1.0:
        x = x * (1.0 / _PRIOR_SCALE)
    if masked:
        # Block covers the full flat row; zero out elements belonging to z_out.
        row = lax.broadcasted_iota(jnp.int32, (tr, 128), 0)
        lane = lax.broadcasted_iota(jnp.int32, (tr, 128), 1)
        idx = (k * tr) * 128 + row * 128 + lane            # global flat index
        x = jnp.where(idx >= off_elems, x, 0.0)

    sq = x * x                                             # VPU
    # Fold the (TR,128) tile into the (8,128) accumulator with vreg adds only
    # (no cross-lane / cross-sublane movement per step).
    acc_ref[...] += jnp.sum(sq.reshape(tr // 8, 8, 128), axis=0)

    @pl.when(k == pl.num_programs(1) - 1)
    def _finalize():
        total = jnp.sum(acc_ref[...])                      # single XLU reduce / batch
        ldj = -0.5 * total - k_split * _LDJ_CONST
        out_ref[...] = jnp.zeros((1, 1, 128), jnp.float32) + ldj


def _logprob_fast(x3, tr, off, k_split, masked):
    n, r_total, _ = x3.shape
    blk = tr * 128
    if masked:
        num_k = r_total // tr
        idx_map = lambda b, k: (b, k, 0)
    else:
        off_blocks = off // blk
        num_k = k_split // blk
        idx_map = lambda b, k, _o=off_blocks: (b, _o + k, 0)

    kern = functools.partial(_logprob_kernel, tr=tr, off_elems=off,
                             k_split=k_split, masked=masked)
    itemsize = jnp.dtype(x3.dtype).itemsize
    out = pl.pallas_call(
        kern,
        out_shape=jax.ShapeDtypeStruct((n, 1, 128), jnp.float32),
        grid=(n, num_k),                                   # batch parallel, K reduce last
        in_specs=[pl.BlockSpec((1, tr, 128), idx_map)],
        out_specs=pl.BlockSpec((1, 1, 128), lambda b, k: (b, 0, 0)),
        scratch_shapes=[pltpu.VMEM((8, 128), jnp.float32)],
        compiler_params=pltpu.CompilerParams(
            dimension_semantics=("parallel", "arbitrary"),
            vmem_limit_bytes=_VMEM_LIMIT_BYTES),
        cost_estimate=pl.CostEstimate(
            flops=2 * n * num_k * blk,
            transcendentals=0,
            bytes_accessed=n * num_k * blk * itemsize + n * 128 * 4),
    )(x3)
    return out[:, 0, 0]


# ---------------------------------------------------------------------------
# Tiny / oddly shaped fallback: single-block kernel over a materialized slice.
# ---------------------------------------------------------------------------
def _logprob_small_kernel(xs_ref, out_ref):
    x = xs_ref[...].astype(jnp.float32)
    if _PRIOR_LOC != 0.0:
        x = x - _PRIOR_LOC
    if _PRIOR_SCALE != 1.0:
        x = x * (1.0 / _PRIOR_SCALE)
    k = xs_ref.shape[-1]
    out_ref[...] = -0.5 * jnp.sum(x * x, axis=-1, keepdims=True) - k * _LDJ_CONST


def _logprob_small(flat):
    n, k = flat.shape
    out = pl.pallas_call(
        _logprob_small_kernel,
        out_shape=jax.ShapeDtypeStruct((n, 1), jnp.float32),
        grid=(1,),
        in_specs=[pl.BlockSpec((n, k), lambda i: (0, 0))],
        out_specs=pl.BlockSpec((n, 1), lambda i: (0, 0)),
    )(flat)
    return out[:, 0]


def _normal_logprob_region(x, off, k_split):
    """Per batch row of x (flattened), sum of standard-normal log-probs over the
    contiguous flat element range [off, off + k_split)."""
    n = x.shape[0]
    k_total = math.prod(x.shape[1:])
    assert 0 <= off and off + k_split <= k_total
    itemsize = jnp.dtype(x.dtype).itemsize
    max_rows = _MAX_BLOCK_BYTES // (128 * itemsize)

    if k_total % 128 == 0:
        r_total = k_total // 128
        x3 = x.reshape(n, r_total, 128)                    # free view of contiguous x

        # (a) aligned split: DMA only the prior half straight out of x.
        g = math.gcd(off, k_split)
        if g % 128 == 0:
            tr = _largest_mult8_divisor(g // 128, max_rows)
            if tr is not None:
                return _logprob_fast(x3, tr, off, k_split, masked=False)

        # (b) unaligned split: stream full rows once, mask the kept half.
        tr = _largest_mult8_divisor(r_total, max_rows)
        if tr is not None:
            return _logprob_fast(x3, tr, off, k_split, masked=True)

    # (c) fallback for tiny / non-128-aligned shapes.
    flat = x.reshape(n, k_total)[:, off:off + k_split]
    return _logprob_small(flat)


# ---------------------------------------------------------------------------
# SplitFlow.forward equivalent.
# ---------------------------------------------------------------------------
def split_flow_forward(z, sample=False, key=None):
    """JAX equivalent of SplitFlow.forward (standard-normal prior).

    Returns (z, ldj) exactly like the PyTorch module.
    """
    if not sample:
        n, c, h, w = z.shape
        c_first = (c + 1) // 2          # torch.chunk: first chunk gets ceil(C/2)
        z_out = z[:, :c_first]
        off = c_first * h * w
        k_split = (c - c_first) * h * w
        ldj = _normal_logprob_region(z, off, k_split)
        return z_out, ldj
    else:
        # TODO(synk): test_inv / self.last_split is Python-side module state with no
        # kernel equivalent; prior *sampling* stays in jax.random (fusing
        # pltpu.prng_random_bits sampling + log-prob into one kernel would change the
        # RNG stream vs jax.random.normal), while the log-prob reduction reuses the
        # same tiled Pallas kernel.
        z_split = (jax.random.normal(key, z.shape, dtype=z.dtype) * _PRIOR_SCALE
                   + _PRIOR_LOC)
        z_out = jnp.concatenate([z, z_split], axis=1)
        k_split = math.prod(z.shape[1:])
        ldj = -_normal_logprob_region(z_split, 0, k_split)
        return z_out, ldj


if __name__ == "__main__":
    key = jax.random.PRNGKey(0)
    k1, k2, k3 = jax.random.split(key, 3)

    # --- masked fast path: split boundary (512 elems) not an 8x128 block multiple ---
    z = jax.random.normal(k1, (2, 4, 16, 16), dtype=jnp.float32)
    z_out, ldj = split_flow_forward(z, sample=False)
    jax.block_until_ready((z_out, ldj))
    assert z_out.shape == (2, 2, 16, 16)
    assert ldj.shape == (2,)
    zs = z[:, 2:]
    ref = jnp.sum(-0.5 * zs * zs - _HALF_LOG_2PI, axis=(1, 2, 3))
    assert jnp.allclose(ldj, ref, atol=1e-3, rtol=1e-5), (ldj, ref)

    # --- split-only fast path: split half = 1024 elems, block aligned ---
    z2 = jax.random.normal(k2, (2, 8, 16, 16), dtype=jnp.float32)
    z2_out, ldj2 = split_flow_forward(z2, sample=False)
    jax.block_until_ready((z2_out, ldj2))
    assert z2_out.shape == (2, 4, 16, 16)
    zs2 = z2[:, 4:]
    ref2 = jnp.sum(-0.5 * zs2 * zs2 - _HALF_LOG_2PI, axis=(1, 2, 3))
    assert jnp.allclose(ldj2, ref2, atol=1e-3, rtol=1e-5), (ldj2, ref2)

    # --- sample path (concat + negated log-prob, same reduction machinery) ---
    z_back, ldj_s = split_flow_forward(z_out, sample=True, key=k3)
    jax.block_until_ready((z_back, ldj_s))
    assert z_back.shape == (2, 4, 16, 16)
    assert ldj_s.shape == (2,)
    zs_s = z_back[:, 2:]
    ref_s = -jnp.sum(-0.5 * zs_s * zs_s - _HALF_LOG_2PI, axis=(1, 2, 3))
    assert jnp.allclose(ldj_s, ref_s, atol=1e-3, rtol=1e-5), (ldj_s, ref_s)

    print("KERNEL_OK")
</pallas_src>

<mosaic_0001>
module attributes {stable_mosaic.version = 11 : i64} {
  func.func @_logprob_kernel(%arg0: i32, %arg1: i32, %arg2: memref<1x8x128xf32, #tpu.memory_space<vmem>>, %arg3: memref<1x1x128xf32, #tpu.memory_space<vmem>>, %arg4: memref<8x128xf32, #tpu.memory_space<vmem>>) attributes {dimension_semantics = [#tpu.dimension_semantics<parallel>, #tpu.dimension_semantics<arbitrary>], iteration_bounds = array<i64: 2, 1>, scalar_prefetch = 0 : i64, scratch_operands = 1 : i64, tpu.core_type = #tpu.core_type<tc>, window_params = [{transform_indices = @transform_0, window_bounds = array<i64: 1, 8, 128>}, {transform_indices = @transform_1, window_bounds = array<i64: 1, 1, 128>}]} {
    %c0_i32 = arith.constant 0 : i32
    %0 = arith.cmpi eq, %arg1, %c0_i32 : i32
    %1 = arith.extui %0 : i1 to i32
    %c0_i32_0 = arith.constant 0 : i32
    %2 = arith.cmpi ne, %1, %c0_i32_0 : i32
    scf.if %2 {
      %cst_11 = arith.constant 0.000000e+00 : f32
      %27 = vector.broadcast %cst_11 : f32 to vector<8x128xf32>
      %c0_12 = arith.constant 0 : index
      %c0_13 = arith.constant 0 : index
      %28 = vector.load %arg4[%c0_12, %c0_13] : memref<8x128xf32, #tpu.memory_space<vmem>>, vector<8x128xf32>
      tpu.vector_store %arg4[%c0_12, %c0_13], %27 {strides = array<i32>} : memref<8x128xf32, #tpu.memory_space<vmem>>, vector<8x128xf32>,
    } else {
    }
    %c0 = arith.constant 0 : index
    %c0_1 = arith.constant 0 : index
    %c0_2 = arith.constant 0 : index
    %3 = vector.load %arg2[%c0, %c0_1, %c0_2] : memref<1x8x128xf32, #tpu.memory_space<vmem>>, vector<1x8x128xf32>
    %4 = vector.shape_cast %3 : vector<1x8x128xf32> to vector<8x128xf32>
    %5 = tpu.iota {dimensions = array<i32: 0>} : vector<8x128xi32>
    %6 = tpu.iota {dimensions = array<i32: 1>} : vector<8x128xi32>
    %c8_i32 = arith.constant 8 : i32
    %7 = arith.muli %arg1, %c8_i32 : i32
    %c128_i32 = arith.constant 128 : i32
    %8 = arith.muli %7, %c128_i32 : i32
    %c128_i32_3 = arith.constant 128 : i32
    %9 = vector.broadcast %c128_i32_3 : i32 to vector<8x128xi32>
    %10 = arith.muli %5, %9 : vector<8x128xi32>
    %11 = vector.broadcast %8 : i32 to vector<8x128xi32>
    %12 = arith.addi %11, %10 : vector<8x128xi32>
    %13 = arith.addi %12, %6 : vector<8x128xi32>
    %c512_i32 = arith.constant 512 : i32
    %14 = vector.broadcast %c512_i32 : i32 to vector<8x128xi32>
    %15 = arith.cmpi sge, %13, %14 : vector<8x128xi32>
    %cst = arith.constant 0.000000e+00 : f32
    %16 = vector.broadcast %cst : f32 to vector<8x128xf32>
    %17 = arith.select %15, %4, %16 : vector<8x128xi1>, vector<8x128xf32>
    %18 = arith.mulf %17, %17 : vector<8x128xf32>
    %c0_4 = arith.constant 0 : index
    %c0_5 = arith.constant 0 : index
    %19 = vector.load %arg4[%c0_4, %c0_5] : memref<8x128xf32, #tpu.memory_space<vmem>>, vector<8x128xf32>
    %20 = vector.shape_cast %18 : vector<8x128xf32> to vector<1x8x128xf32>
    %cst_6 = arith.constant dense<0.000000e+00> : vector<8x128xf32>
    %21 = vector.multi_reduction <add>, %20, %cst_6 [0] : vector<1x8x128xf32> to vector<8x128xf32>
    %22 = arith.addf %19, %21 : vector<8x128xf32>
    %c0_7 = arith.constant 0 : index
    %c0_8 = arith.constant 0 : index
    %23 = vector.load %arg4[%c0_7, %c0_8] : memref<8x128xf32, #tpu.memory_space<vmem>>, vector<8x128xf32>
    tpu.vector_store %arg4[%c0_7, %c0_8], %22 {strides = array<i32>} : memref<8x128xf32, #tpu.memory_space<vmem>>, vector<8x128xf32>,
    %c0_i32_9 = arith.constant 0 : i32
    %24 = arith.cmpi eq, %arg1, %c0_i32_9 : i32
    %25 = arith.extui %24 : i1 to i32
    %c0_i32_10 = arith.constant 0 : i32
    %26 = arith.cmpi ne, %25, %c0_i32_10 : i32
    scf.if %26 {
      %c0_11 = arith.constant 0 : index
      %c0_12 = arith.constant 0 : index
      %27 = vector.load %arg4[%c0_11, %c0_12] : memref<8x128xf32, #tpu.memory_space<vmem>>, vector<8x128xf32>
      %28 = vector.shape_cast %27 : vector<8x128xf32> to vector<1x8x128xf32>
      %cst_13 = arith.constant dense<0.000000e+00> : vector<1xf32>
      %29 = vector.multi_reduction <add>, %28, %cst_13 [1, 2] : vector<1x8x128xf32> to vector<1xf32>
      %30 = vector.shape_cast %29 : vector<1xf32> to vector<1x1x1xf32>
      %31 = vector.extract %30[0, 0, 0] : f32 from vector<1x1x1xf32>
      %cst_14 = arith.constant -5.000000e-01 : f32
      %32 = arith.mulf %cst_14, %31 : f32
      %cst_15 = arith.constant 470.496521 : f32
      %33 = arith.subf %32, %cst_15 : f32
      %cst_16 = arith.constant 0.000000e+00 : f32
      %34 = vector.broadcast %cst_16 : f32 to vector<1x1x128xf32>
      %35 = vector.broadcast %33 : f32 to vector<1x1x128xf32>
      %36 = arith.addf %34, %35 : vector<1x1x128xf32>
      %c0_17 = arith.constant 0 : index
      %c0_18 = arith.constant 0 : index
      %c0_19 = arith.constant 0 : index
      %37 = vector.load %arg3[%c0_17, %c0_18, %c0_19] : memref<1x1x128xf32, #tpu.memory_space<vmem>>, vector<1x1x128xf32>
      tpu.vector_store %arg3[%c0_17, %c0_18, %c0_19], %36 {strides = array<i32>} : memref<1x1x128xf32, #tpu.memory_space<vmem>>, vector<1x1x128xf32>,
    } else {
    }
    return
  }
  func.func @transform_0(%arg0: i32, %arg1: i32) -> (i32, i32, i32) {
    %c0_i32 = arith.constant 0 : i32
    %c0_i32_0 = arith.constant 0 : i32
    return %arg0, %arg1, %c0_i32 : i32, i32, i32
  }
  func.func @transform_1(%arg0: i32, %arg1: i32) -> (i32, i32, i32) {
    %c0_i32 = arith.constant 0 : i32
    %c0_i32_0 = arith.constant 0 : i32
    %c0_i32_1 = arith.constant 0 : i32
    return %arg0, %c0_i32, %c0_i32_0 : i32, i32, i32
  }
}

</mosaic_0001>

<bundles_post_ra>
// kernel: tpu_custom_call.1
= control target key start
LH: loop header
LB: loop body
LE: loop exit
PB: predicated region body
PF: predicated region fallthrough
CT: control target
= control target key end

     0   :  { %6 = vsyncpa [#allocation4], 0  ;;  %s596_s0 = inlined_call_operand.hbm [shape: f32[2,8,128], index: 0, kind: input, shape index: {}]   ;;  %s597_s1 = inlined_call_operand.hbm [shape: f32[2,1,128], index: 1, kind: output, shape index: {}]  }
   0x1   :  { %8 = vsyncpa [#allocation4 + $0x1], 0 }
   0x2   :  { %9 = vsyncpa [#allocation5], 0 }
   0x3   :  { %11 = vsyncpa [#allocation5 + $0x1], 0  ;;  %s475_s6 = smov 0   ;;  %s477_s7 = smov 0  }
   0x4   :  { %s479_s8 = smov 0   ;;  %s481_s9 = smov 0  }
   0x5   :  { %s483_s10 = smov 0   ;;  %s485_s11 = smov 0  }
   0x6 LB: > { %s276_s12 = sadd.s32 4294967295, %s463_s11   ;;  %s277_s13 = sadd.s32 4294967294, %s463_s11   ;;  %s463_s11 = sphi %s485_s11, %s17_s11   ;;  %s459_s10 = sphi %s483_s10, %s606_s10   ;;  %s455_s9 = sphi %s481_s9, %s605_s9   ;;  %s451_s8 = sphi %s479_s8, %s604_s8   ;;  %s447_s7 = sphi %s477_s7, %s603_s7   ;;  %s443_s6 = sphi %s475_s6, %s602_s6  }
   0x7   : > { %s29_s14 = sadd.s32 1, %s459_s10  ;;  %s38_s15 = sadd.s32 1, %s451_s8 }
   0x8   : > { %p31_p0 = scmp.ge.s32.totalorder %s29_s14, 2  ;;  %p45_p1 = scmp.ne.s32.totalorder %s451_s8, %s447_s7 }
   0x9   : > { %p46_p2 = scmp.eq.s32.totalorder %s463_s11, 0  ;;  %p51_p3 = scmp.ne.s32.totalorder %s447_s7, %s443_s6 }
   0xa   : > { %s608_s14 = smov (%p31_p0, %s29_s14), 0  ;;  %p52_p5 = scmp.eq.s32.totalorder %s276_s12, 0 }
   0xb   : > { %p516_p4 = por %p46_p2, %p45_p1  ;;  %s33_s17 = ssub.s32 %s459_s10, %s608_s14 }
   0xc   : > { %p75_p6 = scmp.eq.s32.totalorder %s276_s12, 1  ;;  %p36_p7 = scmp.eq.s32.totalorder %s33_s17, 0 }
   0xd   : > { %p522_p8 = por %p52_p5, %p51_p3  ;;  %p81_p10 = scmp.eq.s32.totalorder %s277_s13, 1 }
   0xe   : > { %p526_p9 = por %p75_p6, %p45_p1  ;;  %p279_p12 = scmp.ge.s32.totalorder %s463_s11, 2 }
   0xf   : > { %s531_s20 = scalar_select %p36_p7, %s451_s8, %s38_s15  }
  0x10   : > { %p533_p11 = por %p81_p10, %p51_p3  ;;  %p301_p13 = scmp.lt.s32.totalorder %s463_s11, 2 }
  0x11   : > { %s101_s22 = sand.u32 1, %s451_s8   ;;  %s281_s24 = sshll.u32 %s459_s10, 3 }
  0x12   : > { %s280_s23 = sshll.u32 %s101_s22, 3  ;;  %s110_s27 = scalar_lea.hbm %s596_s0, %s281_s24 }
  0x13   : > { %s105_s28 = scalar_lea.vmem [#allocation3], %s280_s23  ;;  %s112_s30 = sshll.u32 %s110_s27, 4  ;;  %s113_s30 = int_to_ptr.hbm [resolvable:$true] %s112_s30 }
  0x14   : > { %s114_s29 = sshll.u32 %s105_s28, 4  ;;  %p294_p0 = pnand %p301_p13, %p516_p4  ;;  %s115_s29 = int_to_ptr.vmem [resolvable:$true] %s114_s29 }
  0x15   : > { %p282_p1 = scmp.ge.s32.totalorder %s463_s11, 1  ;;  %p119_p2 = scmp.lt.s32.totalorder %s463_s11, 3 }
  0x16   : > { %s102_s2 = scalar_lea.sflag [#allocation4], %s101_s22 }
  0x17   : > { %296 = dma.hbm_to_vmem [thread:$0]  (!%p294_p0), %s113_s30, 128, %s115_s29, %s102_s2  }
  0x18   : > { %p120_p3 = pnand %p282_p1, %p119_p2 }
  0x19   : > { %s549_s3 = sand.u32 (!%p120_p3), 1, %s447_s7  }
  0x1a   : > { %123 = sbr.rel (%p120_p3) target bundleno = 230 (0xe6), region = 24  ;;  %s283_s4 = sshll.u32 (!%p120_p3), %s549_s3, 3 }
  0x1b   : > { %s126_s5 = scalar_lea.sflag (!%p120_p3), [#allocation4], %s549_s3  ;;  %s129_s12 = scalar_lea.vmem (!%p120_p3), [#allocation3], %s283_s4 }
  0x1f   : > { %434 = dma.done.wait (%p522_p8), %s126_s5, 128  }
  0x20   : > { %436 = vsyncadd (%p522_p8), %s126_s5, 4294967168  ;;  %v154_v0 = vlaneseq  ;;  %v153_v5 = vld [vmem:[%s129_s12] sm:$0xff]  ;;  %s197_s16 = scalar_lea.hbm %s597_s1, %s455_s9  ;;  %s147_s18 = scalar_lea.vmem [#allocation6], %s549_s3 }
  0x21   : > { %s199_s22 = sshll.u32 %s147_s18, 4  ;;  %s201_s24 = sshll.u32 %s197_s16, 4  ;;  %s200_s22 = int_to_ptr.vmem [resolvable:$true] %s199_s22  ;;  %s202_s24 = int_to_ptr.hbm [resolvable:$true] %s201_s24 }
  0x22   : > { %v155_v1 = vshrl.u32 %v154_v0, 7  ;;  %v157_v2 = vand.u32 127, %v154_v0  ;;  %s189_s26 = scalar_lea.sflag [#allocation5], %s549_s3  ;;  %s395_s27 = sshra.s32 %s202_s24, 4  ;;  %s396_s27 = int_to_ptr.hbm [resolvable:$true] %s395_s27 }
  0x23   : > { %s397_s28 = scalar_lea.hbm %s396_s27, 1  ;;  %s401_s30 = scalar_lea.hbm %s597_s1, 2 }
  0x24   : > { %v159_v3 = vmul.u32 128, %v155_v1  ;;  %p398_p4 = scmp.ne.s32.totalorder %s396_s27, %s397_s28  ;;  %p402_p7 = scmp.lt.s32.totalorder %s396_s27, %s597_s1 }
  0x25   : > { %p403_p8 = scmp.lt.s32.totalorder %s401_s30, %s397_s28 }
  0x26   : > { %v162_v4 = vadd.s32 %v159_v3, %v157_v2  ;;  %p399_p5 = pnand %p398_p4, %p526_p9 }
  0x27   : > { %p404_p10 = por %p403_p8, %p402_p7 }
  0x28   : > { %vm163_vm0 = vcmp.ge.s32.totalorder %v162_v4, 512  ;;  %p400_p6 = pneg %p399_p5 }
  0x29   : > { %v164_v6 = vsel %vm163_vm0, %v153_v5, 0.0 }
  0x2a   : > { %v165_v7 = vmul.f32 %v164_v6, %v164_v6  ;;  %p405_p13 = pnand %p404_p10, %p400_p6 }
  0x2c   : > { %174 = vadd.xlane.f32.xlu0 %v165_v7 }
  0x9f   : > { %v175_v8 = vpop.xlane.xlu0 %174 }
  0xa0   : > { %v176_v9 = vrot.slane %v175_v8, 4 }
  0xa2   : > { %v177_v10 = vadd.f32 %v176_v9, %v175_v8 }
  0xa4   : > { %v178_v11 = vrot.slane %v177_v10, 2 }
  0xa6   : > { %v179_v12 = vadd.f32 %v178_v11, %v177_v10 }
  0xa8   : > { %v180_v13 = vrot.slane %v179_v12, 1 }
  0xaa   : > { %v181_v14 = vadd.f32 %v180_v13, %v179_v12 }
  0xac   : > { %287 = vpush %v181_v14 }
  0xdd   : > { %s288_s17 = spop %287 }
  0xde   : > { %s183_s23 = smul.f32 -0.5, %s288_s17 }
  0xe0   : > { %s284_s25 = sadd.f32 -470.49652, %s183_s23 }
  0xe2   : > { %v185_v15 = vstv %s284_s25 }
  0xe3   : > { %187 = vst [vmem:[%s147_s18] sm:$0x1] %v185_v15 }
  0xe4   : > { %408 = shalt.err (!%p405_p13)
}
  0xe5   : > { %291 = dma.vmem_to_hbm [thread:$0]  (%p526_p9), %s200_s22, 16, %s202_s24, %s189_s26  }
  0xe6 PF: > { %s213_s3 = sand.u32 1, %s443_s6   ;;  %p298_p0 = pnand %p279_p12, %p533_p11 }
  0xe7   : > { %s214_s5 = scalar_lea.sflag [#allocation5], %s213_s3 }
  0xe8   : > { %p299_p1 = pneg %p298_p0 }
  0xea   : > { %438 = dma.done.wait (%p299_p1), %s214_s5, 16  }
  0xeb   : > { %440 = vsyncadd (%p299_p1), %s214_s5, 4294967280  ;;  %s17_s11 = sadd.s32 1, %s463_s11   ;;  %s602_s6 = smov %s447_s7 }
  0xec   : > { %p14_p2 = scmp.ge.s32.totalorder %s17_s11, 4   ;;  %s603_s7 = smov %s451_s8 }
  0xed   : > { %s604_s8 = smov %s531_s20  ;;  %s605_s9 = smov %s459_s10 }
  0xee   : > { %s606_s10 = smov %s608_s14  ;;  %16 = sbr.rel (!%p14_p2) target bundleno = 6 (0x6), region = 77 }
  0xf3   :  { %219 = vsyncpa [#allocation4], 1 }
  0xf4   :  { %221 = vsyncpa [#allocation4 + $0x1], 1 }
  0xf5   :  { %222 = vsyncpa [#allocation5], 1 }
  0xf6   :  { %224 = vsyncpa [#allocation5 + $0x1], 1 }

</bundles_post_ra>
